<compile_context>
chip_gen: v7x
topology: tpu7x:2x2x1
jax: 0.10.0
libtpu: 0.0.40
codegen_flags: <defaults>
</compile_context>

<pallas_src>
import functools

import jax
import jax.numpy as jnp
from jax import lax
from jax.experimental import pallas as pl
from jax.experimental.pallas import tpu as pltpu

NEG_SLOPE = 0.3
BN_EPS = 1e-5
_VMEM_LIMIT = 32 * 1024 * 1024   # valid on v5e/v6e (128 MiB) and v7x (64 MiB)


def _round_up(v, m):
    return (v + m - 1) // m * m


def relu_conv_bn_half(x, w, gamma, beta, *, stride, padding,
                      compute_dtype=jnp.bfloat16):
    """x: (N, C_in, L) f32; w: (C_out, C_in, K) f32; gamma/beta: (C_out,) f32.

    Returns (N, C_out, L_pool) f32, matching the PyTorch module (training-mode
    BatchNorm batch statistics, biased variance, eps=1e-5).
    """
    N, C_in, L = x.shape
    C_out, _, K = w.shape

    L_conv = (L + 2 * padding - K) // stride + 1
    L_pool = L_conv // 2
    assert L_pool >= 1, "sequence too short after conv/pool"

    P = 2 * stride                              # polyphase components
    Lph = L_pool + (stride + K - 1) // P        # per-phase length the kernel needs
    L_target = P * Lph
    C_out_pad = _round_up(C_out, 8)

    # ---------------- wrapper-side layout prep (cheap XLA, ~|x| bytes) ----------
    x_c = x.astype(compute_dtype)
    x_pad = jnp.pad(x_c, ((0, 0), (0, 0), (padding, padding)))   # leaky(0)=0, safe
    L_padded = x_pad.shape[-1]
    if L_target > L_padded:
        x_pad = jnp.pad(x_pad, ((0, 0), (0, 0), (0, L_target - L_padded)))
    else:
        x_pad = x_pad[:, :, :L_target]          # trailing elements are never used
    # phases[n, p, ci, t] = x_pad[n, ci, P*t + p]
    phases = x_pad.reshape(N, C_in, Lph, P).transpose(0, 3, 1, 2)

    # weights: (C_out, C_in, K) -> (K, C_out_pad, C_in), zero-pad extra channels
    w_t = jnp.transpose(w, (2, 0, 1)).astype(jnp.float32)
    w_t = jnp.pad(w_t, ((0, 0), (0, C_out_pad - C_out), (0, 0)))
    w_t = w_t.astype(compute_dtype)

    # ---------------- phase 1: leaky -> conv -> maxpool + partial BN stats ------
    def _phase1_kernel(ph_ref, w_ref, pooled_ref, stats_ref):
        xq = ph_ref[...]                                  # (P, C_in, Lph)
        xf = xq.astype(jnp.float32)
        act = jnp.where(xf >= 0, xf, NEG_SLOPE * xf)      # LeakyReLU in f32
        act = act.astype(compute_dtype)                   # bf16 for the MXU
        w_all = w_ref[...]                                # (K, C_out_pad, C_in)

        c = [None, None]                                  # the two pool positions
        for j in range(2):
            for k in range(K):
                kp = j * stride + k
                p, off = kp % P, kp // P
                a = act[p, :, off:off + L_pool]           # (C_in, L_pool) contiguous
                d = jnp.dot(w_all[k], a,
                            preferred_element_type=jnp.float32)
                c[j] = d if c[j] is None else c[j] + d
        pooled = jnp.maximum(c[0], c[1])                  # (C_out_pad, L_pool) f32

        pooled_ref[...] = pooled
        stats_ref[:, 0:1] = jnp.sum(pooled, axis=-1, keepdims=True)
        stats_ref[:, 1:2] = jnp.sum(pooled * pooled, axis=-1, keepdims=True)

    pooled, stats = pl.pallas_call(
        _phase1_kernel,
        out_shape=(jax.ShapeDtypeStruct((N, C_out_pad, L_pool), jnp.float32),
                   jax.ShapeDtypeStruct((N, C_out_pad, 2), jnp.float32)),
        grid=(N,),
        in_specs=[
            pl.BlockSpec((None, P, C_in, Lph), lambda n: (n, 0, 0, 0)),
            pl.BlockSpec((K, C_out_pad, C_in), lambda n: (0, 0, 0)),   # resident
        ],
        out_specs=(
            pl.BlockSpec((None, C_out_pad, L_pool), lambda n: (n, 0, 0)),
            pl.BlockSpec((None, C_out_pad, 2), lambda n: (n, 0, 0)),
        ),
        compiler_params=pltpu.CompilerParams(
            dimension_semantics=("parallel",),
            vmem_limit_bytes=_VMEM_LIMIT),
    )(phases, w_t)

    # ---------------- combine global BN statistics (tiny XLA) -------------------
    cnt = jnp.float32(N * L_pool)
    ch_sum = jnp.sum(stats[:, :, 0], axis=0)              # (C_out_pad,)
    ch_ssq = jnp.sum(stats[:, :, 1], axis=0)
    mean = ch_sum / cnt
    var = jnp.maximum(ch_ssq / cnt - mean * mean, 0.0)    # biased (PyTorch norm)
    inv = lax.rsqrt(var + BN_EPS)
    gamma_p = jnp.pad(gamma.astype(jnp.float32), (0, C_out_pad - C_out))
    beta_p = jnp.pad(beta.astype(jnp.float32), (0, C_out_pad - C_out))
    scale = (gamma_p * inv).reshape(C_out_pad, 1)
    shift = (beta_p - mean * gamma_p * inv).reshape(C_out_pad, 1)

    # ---------------- phase 2: normalize (elementwise, tiled over N) ------------
    def _phase2_kernel(pooled_ref, scale_ref, shift_ref, y_ref):
        yv = pooled_ref[...] * scale_ref[...] + shift_ref[...]
        y_ref[...] = yv[:C_out, :]

    y = pl.pallas_call(
        _phase2_kernel,
        out_shape=jax.ShapeDtypeStruct((N, C_out, L_pool), jnp.float32),
        grid=(N,),
        in_specs=[
            pl.BlockSpec((None, C_out_pad, L_pool), lambda n: (n, 0, 0)),
            pl.BlockSpec((C_out_pad, 1), lambda n: (0, 0)),
            pl.BlockSpec((C_out_pad, 1), lambda n: (0, 0)),
        ],
        out_specs=pl.BlockSpec((None, C_out, L_pool), lambda n: (n, 0, 0)),
        compiler_params=pltpu.CompilerParams(
            dimension_semantics=("parallel",),
            vmem_limit_bytes=_VMEM_LIMIT),
    )(pooled, scale, shift)

    return y


def _reference(x, w, gamma, beta, *, stride, padding):
    """Pure-JAX f32 reference of the PyTorch forward (training-mode BN)."""
    act = jnp.where(x >= 0, x, NEG_SLOPE * x)
    conv = lax.conv_general_dilated(
        act, w, window_strides=(stride,), padding=[(padding, padding)],
        dimension_numbers=("NCH", "OIH", "NCH"))
    L_conv = conv.shape[-1]
    L_pool = L_conv // 2
    pooled = jnp.max(
        conv[:, :, :2 * L_pool].reshape(conv.shape[0], conv.shape[1], L_pool, 2),
        axis=-1)
    mean = jnp.mean(pooled, axis=(0, 2), keepdims=True)
    var = jnp.mean((pooled - mean) ** 2, axis=(0, 2), keepdims=True)
    normed = (pooled - mean) * lax.rsqrt(var + BN_EPS)
    return normed * gamma.reshape(1, -1, 1) + beta.reshape(1, -1, 1)


if __name__ == "__main__":
    # Small shapes consistent with the module (Conv1d => input is (N, C_in, L)).
    N, C_in, C_out, L = 2, 4, 8, 16
    kernel_size, stride, padding = 3, 1, 1

    key = jax.random.PRNGKey(0)
    kx, kw = jax.random.split(key)
    x = jax.random.normal(kx, (N, C_in, L), dtype=jnp.float32)
    w = (jax.random.normal(kw, (C_out, C_in, kernel_size), dtype=jnp.float32)
         * (1.0 / (C_in * kernel_size) ** 0.5))
    gamma = jnp.ones((C_out,), dtype=jnp.float32)   # BatchNorm1d default init
    beta = jnp.zeros((C_out,), dtype=jnp.float32)

    fn = jax.jit(functools.partial(relu_conv_bn_half, stride=stride,
                                   padding=padding))
    out = jax.block_until_ready(fn(x, w, gamma, beta))

    ref = _reference(x, w, gamma, beta, stride=stride, padding=padding)
    assert out.shape == ref.shape, (out.shape, ref.shape)
    # bf16 matmul inputs (f32 accumulation + f32 BN) -> relaxed tolerance vs f32 ref.
    assert jnp.allclose(out, ref, atol=5e-2, rtol=5e-2), "mismatch vs reference"

    print("KERNEL_OK")
</pallas_src>

<mosaic_0001>
module attributes {stable_mosaic.version = 11 : i64} {
  func.func @_phase1_kernel(%arg0: i32, %arg1: memref<1x2x4x9xbf16, #tpu.memory_space<vmem>>, %arg2: memref<3x8x4xbf16, #tpu.memory_space<vmem>>, %arg3: memref<1x8x8xf32, #tpu.memory_space<vmem>>, %arg4: memref<1x8x2xf32, #tpu.memory_space<vmem>>) attributes {dimension_semantics = [#tpu.dimension_semantics<parallel>], iteration_bounds = array<i64: 2>, scalar_prefetch = 0 : i64, scratch_operands = 0 : i64, tpu.core_type = #tpu.core_type<tc>, window_params = [{transform_indices = @transform_0, window_bounds = array<i64: 1, 2, 4, 9>}, {pipeline_mode = #tpu.pipeline_mode<synchronous>, transform_indices = @transform_1, window_bounds = array<i64: 3, 8, 4>}, {transform_indices = @transform_2, window_bounds = array<i64: 1, 8, 8>}, {transform_indices = @transform_3, window_bounds = array<i64: 1, 8, 2>}]} {
    %c0 = arith.constant 0 : index
    %c0_0 = arith.constant 0 : index
    %c0_1 = arith.constant 0 : index
    %c0_2 = arith.constant 0 : index
    %0 = vector.load %arg1[%c0, %c0_0, %c0_1, %c0_2] : memref<1x2x4x9xbf16, #tpu.memory_space<vmem>>, vector<1x2x4x9xbf16>
    %1 = vector.shape_cast %0 : vector<1x2x4x9xbf16> to vector<2x4x9xbf16>
    %2 = arith.extf %1 : vector<2x4x9xbf16> to vector<2x4x9xf32>
    %cst = arith.constant 0.000000e+00 : f32
    %3 = vector.broadcast %cst : f32 to vector<2x4x9xf32>
    %4 = arith.cmpf oge, %2, %3 : vector<2x4x9xf32>
    %cst_3 = arith.constant 3.000000e-01 : f32
    %5 = vector.broadcast %cst_3 : f32 to vector<2x4x9xf32>
    %6 = arith.mulf %5, %2 : vector<2x4x9xf32>
    %7 = arith.select %4, %2, %6 : vector<2x4x9xi1>, vector<2x4x9xf32>
    %8 = arith.truncf %7 : vector<2x4x9xf32> to vector<2x4x9xbf16>
    %c0_4 = arith.constant 0 : index
    %c0_5 = arith.constant 0 : index
    %c0_6 = arith.constant 0 : index
    %9 = vector.load %arg2[%c0_4, %c0_5, %c0_6] : memref<3x8x4xbf16, #tpu.memory_space<vmem>>, vector<3x8x4xbf16>
    %10 = vector.extract_strided_slice %8 {offsets = [0, 0, 0], sizes = [1, 4, 8], strides = [1, 1, 1]} : vector<2x4x9xbf16> to vector<1x4x8xbf16>
    %11 = vector.shape_cast %10 : vector<1x4x8xbf16> to vector<4x8xbf16>
    %12 = vector.extract_strided_slice %9 {offsets = [0, 0, 0], sizes = [1, 8, 4], strides = [1, 1, 1]} : vector<3x8x4xbf16> to vector<1x8x4xbf16>
    %13 = vector.shape_cast %12 : vector<1x8x4xbf16> to vector<8x4xbf16>
    %cst_7 = arith.constant dense<0.000000e+00> : vector<8x8xf32>
    %14 = tpu.matmul %13, %11, %cst_7 {dimension_numbers = #tpu.dot_dimension_numbers<[1], [0], [0], [1], [0, 0, 1, 1], [], []>} : vector<8x4xbf16>, vector<4x8xbf16>, vector<8x8xf32> -> vector<8x8xf32>
    %15 = vector.extract_strided_slice %8 {offsets = [1, 0, 0], sizes = [1, 4, 8], strides = [1, 1, 1]} : vector<2x4x9xbf16> to vector<1x4x8xbf16>
    %16 = vector.shape_cast %15 : vector<1x4x8xbf16> to vector<4x8xbf16>
    %17 = vector.extract_strided_slice %9 {offsets = [1, 0, 0], sizes = [1, 8, 4], strides = [1, 1, 1]} : vector<3x8x4xbf16> to vector<1x8x4xbf16>
    %18 = vector.shape_cast %17 : vector<1x8x4xbf16> to vector<8x4xbf16>
    %cst_8 = arith.constant dense<0.000000e+00> : vector<8x8xf32>
    %19 = tpu.matmul %18, %16, %cst_8 {dimension_numbers = #tpu.dot_dimension_numbers<[1], [0], [0], [1], [0, 0, 1, 1], [], []>} : vector<8x4xbf16>, vector<4x8xbf16>, vector<8x8xf32> -> vector<8x8xf32>
    %20 = arith.addf %14, %19 : vector<8x8xf32>
    %21 = vector.extract_strided_slice %8 {offsets = [0, 0, 1], sizes = [1, 4, 8], strides = [1, 1, 1]} : vector<2x4x9xbf16> to vector<1x4x8xbf16>
    %22 = vector.shape_cast %21 : vector<1x4x8xbf16> to vector<4x8xbf16>
    %23 = vector.extract_strided_slice %9 {offsets = [2, 0, 0], sizes = [1, 8, 4], strides = [1, 1, 1]} : vector<3x8x4xbf16> to vector<1x8x4xbf16>
    %24 = vector.shape_cast %23 : vector<1x8x4xbf16> to vector<8x4xbf16>
    %cst_9 = arith.constant dense<0.000000e+00> : vector<8x8xf32>
    %25 = tpu.matmul %24, %22, %cst_9 {dimension_numbers = #tpu.dot_dimension_numbers<[1], [0], [0], [1], [0, 0, 1, 1], [], []>} : vector<8x4xbf16>, vector<4x8xbf16>, vector<8x8xf32> -> vector<8x8xf32>
    %26 = arith.addf %20, %25 : vector<8x8xf32>
    %27 = vector.extract_strided_slice %8 {offsets = [1, 0, 0], sizes = [1, 4, 8], strides = [1, 1, 1]} : vector<2x4x9xbf16> to vector<1x4x8xbf16>
    %28 = vector.shape_cast %27 : vector<1x4x8xbf16> to vector<4x8xbf16>
    %29 = vector.extract_strided_slice %9 {offsets = [0, 0, 0], sizes = [1, 8, 4], strides = [1, 1, 1]} : vector<3x8x4xbf16> to vector<1x8x4xbf16>
    %30 = vector.shape_cast %29 : vector<1x8x4xbf16> to vector<8x4xbf16>
    %cst_10 = arith.constant dense<0.000000e+00> : vector<8x8xf32>
    %31 = tpu.matmul %30, %28, %cst_10 {dimension_numbers = #tpu.dot_dimension_numbers<[1], [0], [0], [1], [0, 0, 1, 1], [], []>} : vector<8x4xbf16>, vector<4x8xbf16>, vector<8x8xf32> -> vector<8x8xf32>
    %32 = vector.extract_strided_slice %8 {offsets = [0, 0, 1], sizes = [1, 4, 8], strides = [1, 1, 1]} : vector<2x4x9xbf16> to vector<1x4x8xbf16>
    %33 = vector.shape_cast %32 : vector<1x4x8xbf16> to vector<4x8xbf16>
    %34 = vector.extract_strided_slice %9 {offsets = [1, 0, 0], sizes = [1, 8, 4], strides = [1, 1, 1]} : vector<3x8x4xbf16> to vector<1x8x4xbf16>
    %35 = vector.shape_cast %34 : vector<1x8x4xbf16> to vector<8x4xbf16>
    %cst_11 = arith.constant dense<0.000000e+00> : vector<8x8xf32>
    %36 = tpu.matmul %35, %33, %cst_11 {dimension_numbers = #tpu.dot_dimension_numbers<[1], [0], [0], [1], [0, 0, 1, 1], [], []>} : vector<8x4xbf16>, vector<4x8xbf16>, vector<8x8xf32> -> vector<8x8xf32>
    %37 = arith.addf %31, %36 : vector<8x8xf32>
    %38 = vector.extract_strided_slice %8 {offsets = [1, 0, 1], sizes = [1, 4, 8], strides = [1, 1, 1]} : vector<2x4x9xbf16> to vector<1x4x8xbf16>
    %39 = vector.shape_cast %38 : vector<1x4x8xbf16> to vector<4x8xbf16>
    %40 = vector.extract_strided_slice %9 {offsets = [2, 0, 0], sizes = [1, 8, 4], strides = [1, 1, 1]} : vector<3x8x4xbf16> to vector<1x8x4xbf16>
    %41 = vector.shape_cast %40 : vector<1x8x4xbf16> to vector<8x4xbf16>
    %cst_12 = arith.constant dense<0.000000e+00> : vector<8x8xf32>
    %42 = tpu.matmul %41, %39, %cst_12 {dimension_numbers = #tpu.dot_dimension_numbers<[1], [0], [0], [1], [0, 0, 1, 1], [], []>} : vector<8x4xbf16>, vector<4x8xbf16>, vector<8x8xf32> -> vector<8x8xf32>
    %43 = arith.addf %37, %42 : vector<8x8xf32>
    %44 = arith.maximumf %26, %43 : vector<8x8xf32>
    %c0_13 = arith.constant 0 : index
    %c0_14 = arith.constant 0 : index
    %c0_15 = arith.constant 0 : index
    %45 = vector.load %arg3[%c0_13, %c0_14, %c0_15] : memref<1x8x8xf32, #tpu.memory_space<vmem>>, vector<1x8x8xf32>
    %46 = vector.shape_cast %45 : vector<1x8x8xf32> to vector<8x8xf32>
    %47 = vector.shape_cast %44 : vector<8x8xf32> to vector<1x8x8xf32>
    tpu.vector_store %arg3[%c0_13, %c0_14, %c0_15], %47 {strides = array<i32>} : memref<1x8x8xf32, #tpu.memory_space<vmem>>, vector<1x8x8xf32>,
    %cst_16 = arith.constant dense<0.000000e+00> : vector<8xf32>
    %48 = vector.multi_reduction <add>, %44, %cst_16 [1] : vector<8x8xf32> to vector<8xf32>
    %49 = vector.shape_cast %48 : vector<8xf32> to vector<8x1xf32>
    %c0_17 = arith.constant 0 : index
    %c0_18 = arith.constant 0 : index
    %c0_19 = arith.constant 0 : index
    %50 = vector.load %arg4[%c0_17, %c0_18, %c0_19] : memref<1x8x2xf32, #tpu.memory_space<vmem>>, vector<1x8x1xf32>
    %51 = vector.shape_cast %50 : vector<1x8x1xf32> to vector<8x1xf32>
    %52 = vector.shape_cast %49 : vector<8x1xf32> to vector<1x8x1xf32>
    tpu.vector_store %arg4[%c0_17, %c0_18, %c0_19], %52 {strides = array<i32>} : memref<1x8x2xf32, #tpu.memory_space<vmem>>, vector<1x8x1xf32>,
    %53 = arith.mulf %44, %44 : vector<8x8xf32>
    %cst_20 = arith.constant dense<0.000000e+00> : vector<8xf32>
    %54 = vector.multi_reduction <add>, %53, %cst_20 [1] : vector<8x8xf32> to vector<8xf32>
    %55 = vector.shape_cast %54 : vector<8xf32> to vector<8x1xf32>
    %c0_21 = arith.constant 0 : index
    %c0_22 = arith.constant 0 : index
    %c1 = arith.constant 1 : index
    %56 = vector.load %arg4[%c0_21, %c0_22, %c1] : memref<1x8x2xf32, #tpu.memory_space<vmem>>, vector<1x8x1xf32>
    %57 = vector.shape_cast %56 : vector<1x8x1xf32> to vector<8x1xf32>
    %58 = vector.shape_cast %55 : vector<8x1xf32> to vector<1x8x1xf32>
    tpu.vector_store %arg4[%c0_21, %c0_22, %c1], %58 {strides = array<i32>} : memref<1x8x2xf32, #tpu.memory_space<vmem>>, vector<1x8x1xf32>,
    return
  }
  func.func @transform_0(%arg0: i32) -> (i32, i32, i32, i32) {
    %c0_i32 = arith.constant 0 : i32
    %c0_i32_0 = arith.constant 0 : i32
    %c0_i32_1 = arith.constant 0 : i32
    %c0_i32_2 = arith.constant 0 : i32
    return %arg0, %c0_i32, %c0_i32_0, %c0_i32_1 : i32, i32, i32, i32
  }
  func.func @transform_1(%arg0: i32) -> (i32, i32, i32) {
    %c0_i32 = arith.constant 0 : i32
    %c0_i32_0 = arith.constant 0 : i32
    %c0_i32_1 = arith.constant 0 : i32
    %c0_i32_2 = arith.constant 0 : i32
    return %c0_i32, %c0_i32_0, %c0_i32_1 : i32, i32, i32
  }
  func.func @transform_2(%arg0: i32) -> (i32, i32, i32) {
    %c0_i32 = arith.constant 0 : i32
    %c0_i32_0 = arith.constant 0 : i32
    %c0_i32_1 = arith.constant 0 : i32
    return %arg0, %c0_i32, %c0_i32_0 : i32, i32, i32
  }
  func.func @transform_3(%arg0: i32) -> (i32, i32, i32) {
    %c0_i32 = arith.constant 0 : i32
    %c0_i32_0 = arith.constant 0 : i32
    %c0_i32_1 = arith.constant 0 : i32
    return %arg0, %c0_i32, %c0_i32_0 : i32, i32, i32
  }
}

module attributes {stable_mosaic.version = 11 : i64} {
  func.func @_phase2_kernel(%arg0: i32, %arg1: memref<1x8x8xf32, #tpu.memory_space<vmem>>, %arg2: memref<8x1xf32, #tpu.memory_space<vmem>>, %arg3: memref<8x1xf32, #tpu.memory_space<vmem>>, %arg4: memref<1x8x8xf32, #tpu.memory_space<vmem>>) attributes {dimension_semantics = [#tpu.dimension_semantics<parallel>], iteration_bounds = array<i64: 2>, scalar_prefetch = 0 : i64, scratch_operands = 0 : i64, tpu.core_type = #tpu.core_type<tc>, window_params = [{transform_indices = @transform_0, window_bounds = array<i64: 1, 8, 8>}, {pipeline_mode = #tpu.pipeline_mode<synchronous>, transform_indices = @transform_1, window_bounds = array<i64: 8, 1>}, {pipeline_mode = #tpu.pipeline_mode<synchronous>, transform_indices = @transform_2, window_bounds = array<i64: 8, 1>}, {transform_indices = @transform_3, window_bounds = array<i64: 1, 8, 8>}]} {
    %c0 = arith.constant 0 : index
    %c0_0 = arith.constant 0 : index
    %c0_1 = arith.constant 0 : index
    %0 = vector.load %arg1[%c0, %c0_0, %c0_1] : memref<1x8x8xf32, #tpu.memory_space<vmem>>, vector<1x8x8xf32>
    %1 = vector.shape_cast %0 : vector<1x8x8xf32> to vector<8x8xf32>
    %c0_2 = arith.constant 0 : index
    %c0_3 = arith.constant 0 : index
    %2 = vector.load %arg2[%c0_2, %c0_3] : memref<8x1xf32, #tpu.memory_space<vmem>>, vector<8x1xf32>
    %3 = vector.broadcast %2 : vector<8x1xf32> to vector<8x8xf32>
    %4 = arith.mulf %1, %3 : vector<8x8xf32>
    %c0_4 = arith.constant 0 : index
    %c0_5 = arith.constant 0 : index
    %5 = vector.load %arg3[%c0_4, %c0_5] : memref<8x1xf32, #tpu.memory_space<vmem>>, vector<8x1xf32>
    %6 = vector.broadcast %5 : vector<8x1xf32> to vector<8x8xf32>
    %7 = arith.addf %4, %6 : vector<8x8xf32>
    %c0_6 = arith.constant 0 : index
    %c0_7 = arith.constant 0 : index
    %c0_8 = arith.constant 0 : index
    %8 = vector.load %arg4[%c0_6, %c0_7, %c0_8] : memref<1x8x8xf32, #tpu.memory_space<vmem>>, vector<1x8x8xf32>
    %9 = vector.shape_cast %8 : vector<1x8x8xf32> to vector<8x8xf32>
    %10 = vector.shape_cast %7 : vector<8x8xf32> to vector<1x8x8xf32>
    tpu.vector_store %arg4[%c0_6, %c0_7, %c0_8], %10 {strides = array<i32>} : memref<1x8x8xf32, #tpu.memory_space<vmem>>, vector<1x8x8xf32>,
    return
  }
  func.func @transform_0(%arg0: i32) -> (i32, i32, i32) {
    %c0_i32 = arith.constant 0 : i32
    %c0_i32_0 = arith.constant 0 : i32
    %c0_i32_1 = arith.constant 0 : i32
    return %arg0, %c0_i32, %c0_i32_0 : i32, i32, i32
  }
  func.func @transform_1(%arg0: i32) -> (i32, i32) {
    %c0_i32 = arith.constant 0 : i32
    %c0_i32_0 = arith.constant 0 : i32
    %c0_i32_1 = arith.constant 0 : i32
    return %c0_i32, %c0_i32_0 : i32, i32
  }
  func.func @transform_2(%arg0: i32) -> (i32, i32) {
    %c0_i32 = arith.constant 0 : i32
    %c0_i32_0 = arith.constant 0 : i32
    %c0_i32_1 = arith.constant 0 : i32
    return %c0_i32, %c0_i32_0 : i32, i32
  }
  func.func @transform_3(%arg0: i32) -> (i32, i32, i32) {
    %c0_i32 = arith.constant 0 : i32
    %c0_i32_0 = arith.constant 0 : i32
    %c0_i32_1 = arith.constant 0 : i32
    return %arg0, %c0_i32, %c0_i32_0 : i32, i32, i32
  }
}

</mosaic_0001>

<bundles_post_ra>
// kernel: relu_conv_bn_half.3
= control target key start
LH: loop header
LB: loop body
LE: loop exit
PB: predicated region body
PF: predicated region fallthrough
CT: control target
= control target key end

     0   :  { %8 = vsyncpa [#allocation3], 0  ;;  %s499_s0 = inlined_call_operand.vmem [shape: f32[2,8,8], index: 0, kind: input, shape index: {}]   ;;  %s500_s1 = inlined_call_operand.vmem [shape: f32[8,1], index: 1, kind: input, shape index: {}]   ;;  %s501_s2 = inlined_call_operand.vmem [shape: f32[8,1], index: 2, kind: input, shape index: {}]   ;;  %s502_s3 = inlined_call_operand.hbm [shape: f32[2,8,8], index: 3, kind: output, shape index: {}]  }
   0x1   :  { %10 = vsyncpa [#allocation3 + $0x1], 0  ;;  %s393_s12 = smov 0   ;;  %s395_s13 = smov 0  }
   0x2   :  { %s397_s14 = smov 0   ;;  %s399_s15 = smov 0  }
   0x3 LB: > { %s414_s16 = sadd.s32 4294967295, %s369_s15   ;;  %s256_s17 = sadd.s32 4294967294, %s369_s15   ;;  %s369_s15 = sphi %s399_s15, %s508_s15   ;;  %s365_s14 = sphi %s397_s14, %s507_s14   ;;  %s361_s13 = sphi %s395_s13, %s506_s13   ;;  %s357_s12 = sphi %s393_s12, %s505_s12  }
   0x4   : > { %s418_s18 = sadd.s32 1, %s369_s15   ;;  %s91_s19 = sadd.s32 1, %s365_s14 }
   0x5   : > { %s88_s20 = ssub.s32 %s369_s15, %s418_s18  ;;  %p101_p0 = scmp.ne.s32.totalorder %s365_s14, %s361_s13 }
   0x6   : > { %p89_p1 = scmp.eq.s32.totalorder %s88_s20, 0  ;;  %p102_p2 = scmp.eq.s32.totalorder %s414_s16, 1 }
   0x7   : > { %p107_p3 = scmp.ne.s32.totalorder %s361_s13, %s357_s12  ;;  %p108_p4 = scmp.eq.s32.totalorder %s256_s17, 1 }
   0x8   : > { %s429_s21 = scalar_select %p89_p1, %s365_s14, %s91_s19  }
   0x9   : > { %p431_p5 = por %p102_p2, %p101_p0  ;;  %p435_p6 = por %p108_p4, %p107_p3 }
   0xa   : > { %p259_p7 = scmp.ge.s32.totalorder %s369_s15, 1  ;;  %p139_p8 = scmp.lt.s32.totalorder %s369_s15, 3 }
   0xc   : > { %p140_p9 = pnand %p259_p7, %p139_p8 }
   0xd   : > { %v167_v0 = vld [vmem:[%s500_s1] sm:$0xff] (!%p140_p9)  ;;  %v371_v1 = vmov (!%p140_p9), 0   ;;  %p162_p10 = scmp.lt.s32.totalorder (!%p140_p9), %s414_s16, 1  ;;  %s159_s29 = sand.u32 (!%p140_p9), 1, %s361_s13   ;;  %vm181_vm0 = vcmask (!%p140_p9), 64512  }
   0xe   : > { %143 = sbr.rel (%p140_p9) target bundleno = 163 (0xa3), region = 32  ;;  %306 = vset.pattern.permute.xlu0 (!%p140_p9), %v371_v1  ;;  %v174_v2 = vld [vmem:[%s501_s2] sm:$0xff] (!%p140_p9)  ;;  %s260_s4 = sshll.u32 (!%p140_p9), %s159_s29, 3 }
   0xf   : > { %170 = vperm.xlu0 (!%p140_p9), %306, %v167_v0   ;;  %s263_s8 = sshll.u32 (!%p140_p9), %s414_s16, 7  ;;  %s161_s9 = scalar_lea.vmem (!%p140_p9), [#allocation2], %s260_s4 }
  0x10   : > { %s197_s10 = sshll.u32 (!%p140_p9), %s161_s9, 4  ;;  %s457_s19 = scalar_lea.hbm (!%p140_p9), %s502_s3, %s263_s8  ;;  %s459_s10 = int_to_ptr.vmem [resolvable:$true] %s197_s10 }
  0x11   : > { %s184_s20 = scalar_lea.sflag (!%p140_p9), [#allocation3], %s159_s29  ;;  %s307_s24 = scalar_lea.vmem (!%p140_p9), %s459_s10, 128 }
  0x12   : > { %p308_p11 = scmp.ne.s32.totalorder (!%p140_p9), %s459_s10, %s307_s24 }
  0x13   : > { %177 = vperm.xlu0 (!%p140_p9), %306, %v174_v2  }
  0x14   : > { %p309_p12 = pnand (!%p140_p9), %p308_p11, %p431_p5 }
  0x15   : > { %s163_s28 = scalar_select %p162_p10, %s414_s16, 1 }
  0x16   : > { %p310_p13 = pneg %p309_p12  ;;  %s372_s16 = smov [#allocation2]  }
  0x17   : > { %s261_s30 = sshll.u32 %s163_s28, 3  ;;  %s311_s25 = sshll.u32 %s372_s16, 4  ;;  %s312_s25 = int_to_ptr.vmem [resolvable:$false] %s311_s25 }
  0x18   : > { %s165_s7 = scalar_lea.vmem %s499_s0, %s261_s30  ;;  %s313_s26 = scalar_lea.vmem %s312_s25, 256 }
  0x19   : > { %v166_v4 = vld [vmem:[%s165_s7] sm:$0xff]  ;;  %p314_p0 = scmp.lt.s32.totalorder %s459_s10, %s312_s25  ;;  %p315_p1 = scmp.lt.s32.totalorder %s313_s26, %s307_s24 }
  0x1b   : > { %p316_p2 = por %p315_p1, %p314_p0 }
  0x1d   : > { %p317_p3 = pnand %p316_p2, %p310_p13 }
  0x8e   : > { %v171_v3 = vpop.permute.xlu0 %170 }
  0x8f   : > { %v173_v5 = vmul.f32 %v171_v3, %v166_v4 }
  0x92   : > { %v178_v6 = vpop.permute.xlu0 %177 }
  0x93   : > { %v180_v7 = vadd.f32 %v178_v6, %v173_v5 }
  0x95   : > { %182 = vst.msk [vmem:[%s161_s9] sm:$0xff] %vm181_vm0, %v180_v7 }
  0x96   : > { %320 = shalt.err (!%p317_p3)
}
  0x97   : > { %s321_s27 = scalar_lea.hbm %s457_s19, 128  ;;  %s325_s30 = scalar_lea.hbm %s502_s3, 256 }
  0x98   : > { %p322_p4 = scmp.ne.s32.totalorder %s457_s19, %s321_s27  ;;  %p326_p9 = scmp.lt.u32.totalorder %s457_s19, %s502_s3 }
  0x99   : > { %p327_p10 = scmp.lt.u32.totalorder %s325_s30, %s321_s27  ;;  %p329_p12 = scmp.lt.u32.totalorder %s321_s27, %s457_s19 }
  0x9a   : > { %p323_p7 = pnand %p322_p4, %p431_p5 }
  0x9b   : > { %p328_p11 = por %p327_p10, %p326_p9 }
  0x9c   : > { %p324_p8 = pneg %p323_p7 }
  0x9d   : > { %p330_p13 = por %p329_p12, %p328_p11 }
  0x9f   : > { %p331_p0 = pnand %p330_p13, %p324_p8 }
  0xa1   : > { %334 = shalt.err (!%p331_p0)
}
  0xa2   : > { %266 = dma.vmem_to_hbm [thread:$0]  (%p431_p5), %s459_s10, 128, %s457_s19, %s184_s20  }
  0xa3 PF: > { %p272_p1 = scmp.ge.s32.totalorder %s369_s15, 2  ;;  %s209_s6 = sand.u32 1, %s357_s12  }
  0xa4   : > { %s210_s7 = scalar_lea.sflag [#allocation3], %s209_s6 }
  0xa5   : > { %p269_p2 = pnand %p272_p1, %p435_p6 }
  0xa7   : > { %352 = dma.done.wait (!%p269_p2), %s210_s7, 128  }
  0xa8   : > { %354 = vsyncadd (!%p269_p2), %s210_s7, 4294967168  ;;  %p13_p3 = scmp.ge.s32.totalorder %s418_s18, 4   ;;  %s505_s12 = smov %s361_s13 }
  0xa9   : > { %s506_s13 = smov %s365_s14  ;;  %s507_s14 = smov %s429_s21 }
  0xaa   : > { %s508_s15 = smov %s418_s18  ;;  %15 = sbr.rel (!%p13_p3) target bundleno = 3 (0x3), region = 67 }
  0xb1   :  { %215 = vsyncpa [#allocation3], 1 }
  0xb2   :  { %217 = vsyncpa [#allocation3 + $0x1], 1 }

// kernel: relu_conv_bn_half.2
= control target key start
LH: loop header
LB: loop body
LE: loop exit
PB: predicated region body
PF: predicated region fallthrough
CT: control target
= control target key end

     0   :  { %s689_s12 = smov 0   ;;  %s738_s0 = inlined_call_operand.vmem [shape: bf16[2,2,4,9], index: 0, kind: input, shape index: {}]   ;;  %s739_s1 = inlined_call_operand.vmem [shape: bf16[3,8,4], index: 1, kind: input, shape index: {}]   ;;  %s740_s2 = inlined_call_operand.vmem [shape: f32[2,8,8], index: 2, kind: output, shape index: {0}]   ;;  %s741_s3 = inlined_call_operand.vmem [shape: f32[2,8,2], index: 3, kind: output, shape index: {1}]  }
   0x1 LB: > { %s565_s13 = sadd.s32 4294967295, %s664_s12   ;;  %p569_p0 = scmp.ge.s32.totalorder %s664_s12, 1  ;;  %s664_s12 = sphi %s689_s12, %s14_s12  }
   0x2   : > { %p140_p1 = scmp.lt.s32.totalorder %s664_s12, 3 }
   0x4   : > { %p141_p2 = pnand %p569_p0, %p140_p1 }
   0x5   : > { %p167_p3 = scmp.lt.s32.totalorder (!%p141_p2), %s565_s13, 1  ;;  %v666_v0 = vmov (!%p141_p2), 0.0   ;;  %vm667_vm0 = vmmov (!%p141_p2), 0   ;;  %vm200_vm3 = vcmask (!%p141_p2), 1041408   ;;  %s668_s18 = smov (!%p141_p2), 127   ;;  %vm196_vm4 = vcmask (!%p141_p2), 31744  }
   0x6   : > { %144 = sbr.rel (%p141_p2) target bundleno = 529 (0x211), region = 28  ;;  %595 = vmatprep.subr.bf16.mxu0 (!%p141_p2), %v666_v0  ;;  %597 = vmatprep.mubr.msk.bf16.mxu0 (!%p141_p2), %vm667_vm0, %v666_v0  ;;  %v194_v12 = vld [vmem:[%s739_s1 + $0x4] sm:$0xf] (!%p141_p2)  ;;  %v193_v14 = vld [vmem:[%s739_s1] sm:$0xf] (!%p141_p2)  ;;  %vm468_vm5 = vcmask (!%p141_p2), 64512  }
   0x7   : > { %613 = vmatprep.subr.bf16.mxu1 (!%p141_p2), %v666_v0  ;;  %615 = vmatprep.mubr.msk.bf16.mxu1 (!%p141_p2), %vm667_vm0, %v666_v0  ;;  %v195_v17 = vld [vmem:[%s739_s1 + $0x8] sm:$0xf] (!%p141_p2)  ;;  %vm473_vm6 = vcmask (!%p141_p2), 7168   ;;  %vm479_vm7 = vcmask (!%p141_p2), 15368  }
   0xd   : > { %s743_s13 = smov (!%p167_p3, %s565_s13), 1 }
   0xe   : > { %s582_s14 = sshll.u32 %s743_s13, 2  ;;  %s572_s25 = sshll.u32 %s743_s13, 3 }
   0xf   : > { %s171_s17 = scalar_lea.vmem %s738_s0, %s582_s14  ;;  %s175_s28 = scalar_lea.vmem %s740_s2, %s572_s25 }
  0x10   : > { %v181_v1 = vld [vmem:[%s171_s17] sm:$0x3]  ;;  %v182_v2 = vld [vmem:[%s171_s17 + $0x2] sm:$0x3]  ;;  %s179_s4 = scalar_lea.vmem %s741_s3, %s572_s25 }
  0x11   : > { %v183_v3 = vunpack.c.l.bf16 %v181_v1  ;;  %v184_v4 = vunpack.c.l.bf16 %v182_v2 }
  0x13   : > { %vm185_vm1 = vcmp.ge.f32.partialorder %v183_v3, 0.0  ;;  %v187_v5 = vmul.f32 0.3, %v183_v3  ;;  %vm186_vm2 = vcmp.ge.f32.partialorder %v184_v4, 0.0  ;;  %v188_v6 = vmul.f32 0.3, %v184_v4 }
  0x15   : > { %v189_v7 = vsel %vm185_vm1, %v183_v3, %v187_v5  ;;  %v190_v8 = vsel %vm186_vm2, %v184_v4, %v188_v6 }
  0x16   : > { %v191_v9 = vpack.c.bf16 %v189_v7, %v189_v7  ;;  %v192_v10 = vpack.c.bf16 %v190_v8, %v190_v8 }
  0x18   : > { %291 = vrot.lane.b32.xlu0 %v191_v9, %s668_s18  ;;  %v202_v11 = vsel %vm200_vm3, %v192_v10, 0  ;;  %v248_v13 = vsel %vm200_vm3, %v191_v9, 0 }
  0x19   : > { %596 = vmatpush3.bf16.msra.mxu0 %v202_v11 }
  0x1a   : > { %601 = vmatprep.subr.bf16.mxu0 %v666_v0 }
  0x1c   : > { %421 = vrot.lane.b32.xlu0 %v192_v10, %s668_s18  ;;  %598 = vmatmul.mubr.msk.bf16.vlgmr.msra.gmra.mrb[0].mxu0 %vm196_vm4, %v194_v12 }
  0x1d   : > { %602 = vmatpush3.bf16.msra.mxu0 %v248_v13  ;;  %603 = vmatprep.mubr.msk.bf16.mxu0 %vm667_vm0, %v666_v0 }
  0x1e   : > { %607 = vmatprep.subr.bf16.mxu0 %v666_v0 }
  0x28   : > { %604 = vmatmul.mubr.msk.bf16.vlgmr.msra.gmra.mrb[0].mxu0 %vm196_vm4, %v193_v14 }
  0x29   : > { %609 = vmatprep.mubr.msk.bf16.mxu0 %vm667_vm0, %v666_v0 }
  0x8a   : > { %v292_v15 = vpop.permute.xlu0 %291 }
  0x8b   : > { %v297_v16 = vsel %vm200_vm3, %v292_v15, 0 }
  0x8c   : > { %608 = vmatpush3.bf16.msra.mxu0 %v297_v16  ;;  %614 = vmatpush3.bf16.msra.mxu1 %v297_v16 }
  0x8d   : > { %619 = vmatprep.subr.bf16.mxu1 %v666_v0 }
  0x8e   : > { %v422_v18 = vpop.permute.xlu0 %421 }
  0x8f   : > { %610 = vmatmul.mubr.msk.bf16.vlgmr.msra.gmra.mrb[0].mxu0 %vm196_vm4, %v195_v17  ;;  %616 = vmatmul.mubr.msk.bf16.vlgmr.msra.gmra.mrb[0].mxu1 %vm196_vm4, %v194_v12  ;;  %v424_v19 = vsel %vm200_vm3, %v422_v18, 0 }
  0x90   : > { %620 = vmatpush3.bf16.msra.mxu1 %v202_v11  ;;  %621 = vmatprep.mubr.msk.bf16.mxu1 %vm667_vm0, %v666_v0 }
  0x91   : > { %625 = vmatprep.subr.bf16.mxu1 %v666_v0 }
  0x9b   : > { %622 = vmatmul.mubr.msk.bf16.vlgmr.msra.gmra.mrb[0].mxu1 %vm196_vm4, %v193_v14 }
  0x9c   : > { %626 = vmatpush3.bf16.msra.mxu1 %v424_v19  ;;  %627 = vmatprep.mubr.msk.bf16.mxu1 %vm667_vm0, %v666_v0 }
  0xa7   : > { %628 = vmatmul.mubr.msk.bf16.vlgmr.msra.gmra.mrb[0].mxu1 %vm196_vm4, %v195_v17 }
 0x162   : > { %v333_v20 = vpop.f32.mrb[0].mxu0 }
 0x163   : > { %v611_v21 = vpop.f32.mrb[1].mxu0 }
 0x164   : > { %v336_v22 = vpop.f32.mrb[2].mxu0 }
 0x165   : > { %v612_v23 = vpop.f32.mrb[3].mxu0 }
 0x17a   : > { %v460_v24 = vpop.f32.mrb[0].mxu1 }
 0x17b   : > { %v467_v25 = vmax.f32 %v333_v20, %v460_v24  ;;  %v629_v26 = vpop.f32.mrb[1].mxu1 }
 0x17c   : > { %v463_v27 = vpop.f32.mrb[2].mxu1 }
 0x17d   : > { %v630_v28 = vpop.f32.mrb[3].mxu1  ;;  %v470_v29 = vsel %vm468_vm5, %v467_v25, 0.0  ;;  %469 = vst.msk [vmem:[%s175_s28] sm:$0xff] %vm468_vm5, %v467_v25  ;;  %v475_v30 = vmul.f32 %v467_v25, %v467_v25 }
 0x17e   : > { %471 = vadd.xlane.f32.xlu1 %v470_v29 }
 0x17f   : > { %v476_v31 = vsel %vm468_vm5, %v475_v30, 0.0 }
 0x182   : > { %477 = vadd.xlane.f32.xlu1 %v476_v31 }
 0x20b   : > { %v472_v32 = vpop.xlane.xlu1 %471 }
 0x20c   : > { %474 = vst.msk [vmem:[%s179_s4] sm:$0xff] %vm473_vm6, %v472_v32 }
 0x20f   : > { %v478_v33 = vpop.xlane.xlu1 %477 }
 0x210   : > { %480 = vst.msk [vmem:[%s179_s4] sm:$0xff] %vm479_vm7, %v478_v33 }
 0x211 PF: > { %s14_s12 = sadd.s32 1, %s664_s12  }
 0x212   : > { %p11_p4 = scmp.ge.s32.totalorder %s14_s12, 4  }
 0x214   :  { %13 = sbr.rel (!%p11_p4) target bundleno = 1 (0x1), region = 70 }

</bundles_post_ra>
